<compile_context>
chip_gen: v7x
topology: tpu7x:2x2x1
jax: 0.10.0
libtpu: 0.0.40
codegen_flags: <defaults>
</compile_context>

<pallas_src>
import functools
import math

import jax
import jax.numpy as jnp
from jax.experimental import pallas as pl
from jax.experimental.pallas import tpu as pltpu

EPS = 1e-6
NEG_INF = -1e9  # matches masked_fill(mask == 0, -1000000000.0)


def _round_up(n, m):
    return ((n + m - 1) // m) * m


def _dropout_mask(key, shape, p):
    # Pre-scaled inverted-dropout keep mask in bf16: values in {0, 1/(1-p)}.
    # TODO(synk): RNG stream differs from torch's; Bernoulli-keep + 1/(1-p)
    # rescale semantics are identical.
    keep = jax.random.bernoulli(key, 1.0 - p, shape)
    return (keep.astype(jnp.float32) * (1.0 / (1.0 - p))).astype(jnp.bfloat16)


def _layer_norm_f32(x, gamma, beta):
    d = x.shape[-1]
    mean = jnp.mean(x, axis=-1, keepdims=True)
    diff = x - mean
    var_unb = jnp.sum(diff * diff, axis=-1, keepdims=True) / (d - 1)  # torch.std unbiased
    inv = jax.lax.rsqrt(var_unb + EPS)
    return gamma * (diff * inv) + beta


# ----------------------------- kernels ---------------------------------------

def _ln_qkv_kernel(x_ref, g_ref, b_ref, w_ref, wb_ref, o_ref):
    # K1: y = layernorm(x) @ Wqkv + bqkv   (bf16 MXU operands, f32 accumulation,
    #                                        bf16 activation written to HBM)
    x = x_ref[...].astype(jnp.float32)
    normed = _layer_norm_f32(x, g_ref[...], b_ref[...])
    y = jnp.dot(normed.astype(jnp.bfloat16), w_ref[...],
                preferred_element_type=jnp.float32) + wb_ref[...]
    o_ref[...] = y.astype(o_ref.dtype)


def _mha_core_kernel(*refs, n_heads, dk, use_dropout):
    # K2: per-batch attention.  Heads are static column slices of the (S,3D)
    # qkv block (no JAX-level transposes); output stored as one D-wide block.
    if use_dropout:
        qkv_ref, m_ref, dm_ref, o_ref = refs
    else:
        qkv_ref, m_ref, o_ref = refs
    D = n_heads * dk
    mask = m_ref[0]                                     # (1, S) f32; 0 = masked
    outs = []
    for hd in range(n_heads):                           # static unroll over heads
        q_h = qkv_ref[0, :, hd * dk:(hd + 1) * dk]              # (S, dk) bf16
        k_h = qkv_ref[0, :, D + hd * dk:D + (hd + 1) * dk]      # (S, dk) bf16
        v_h = qkv_ref[0, :, 2 * D + hd * dk:2 * D + (hd + 1) * dk]
        # 1/sqrt(dk) already folded into Wq/bq at the wrapper.
        s = jax.lax.dot_general(q_h, k_h, (((1,), (1,)), ((), ())),
                                preferred_element_type=jnp.float32)  # (S, S)
        s = jnp.where(mask == 0.0, NEG_INF, s)
        s = s - jnp.max(s, axis=-1, keepdims=True)
        p = jnp.exp(s)
        p = p * pl.reciprocal(jnp.sum(p, axis=-1, keepdims=True), approx=True)
        if use_dropout:
            p = p * dm_ref[0, hd]                       # (S,S) bf16 keep mask
        outs.append(jnp.dot(p.astype(jnp.bfloat16), v_h,
                            preferred_element_type=jnp.float32))    # (S, dk)
    o_ref[0] = jnp.concatenate(outs, axis=-1).astype(o_ref.dtype)   # (S, D)
    # TODO(synk): for long sequences replace this whole-S-per-batch kernel with
    #             a flash-style online-softmax kernel tiled over query/KV blocks.


def _proj_ffn_residual_kernel(*refs, use_dropout):
    # K3 (fused): x1 = x + dropout(ctx @ Wo + bo)
    #             out = x1 + dropout( relu(LN2(x1) @ W1 + b1) -> dropout -> @ W2 + b2 )
    if use_dropout:
        (c_ref, wo_ref, bo_ref, x_ref, g_ref, b_ref, w1_ref, b1_ref,
         w2_ref, b2_ref, dmo_ref, dmh_ref, dmf_ref, o_ref) = refs
    else:
        (c_ref, wo_ref, bo_ref, x_ref, g_ref, b_ref, w1_ref, b1_ref,
         w2_ref, b2_ref, o_ref) = refs
    # --- sublayer 1 epilogue: output projection + dropout + residual ---------
    y = jnp.dot(c_ref[...], wo_ref[...],
                preferred_element_type=jnp.float32) + bo_ref[...]
    if use_dropout:
        y = y * dmo_ref[...]
    x1 = x_ref[...].astype(jnp.float32) + y            # f32 residual stream
    # --- sublayer 2: LN2 + FFN + dropout + residual ---------------------------
    normed = _layer_norm_f32(x1, g_ref[...], b_ref[...])
    hdn = jnp.dot(normed.astype(jnp.bfloat16), w1_ref[...],
                  preferred_element_type=jnp.float32) + b1_ref[...]
    hdn = jnp.maximum(hdn, 0.0)
    if use_dropout:
        hdn = hdn * dmh_ref[...]
    y2 = jnp.dot(hdn.astype(jnp.bfloat16), w2_ref[...],
                 preferred_element_type=jnp.float32) + b2_ref[...]
    if use_dropout:
        y2 = y2 * dmf_ref[...]
    o_ref[...] = (x1 + y2).astype(o_ref.dtype)


# ----------------------------- wrapper ----------------------------------------

def encoder_layer_forward(x, mask, params, *, n_heads, dropout_p=0.1,
                          training=False, rng=None, row_tile=256,
                          vmem_limit_bytes=None):
    """Forward pass of the PyTorch `encoderLayer`.

    x:    (B, S, D) float32
    mask: (B, 1, S); nonzero = attend, zero = masked (torch masked_fill semantics)
    row_tile: 256 good for v6e/v7x; use 128 on v5e (16 MiB scoped VMEM default).
    """
    B, S, D = x.shape
    assert D % n_heads == 0
    dk = D // n_heads
    d_ff = params["w1"].shape[1]
    M = B * S
    scale = 1.0 / math.sqrt(dk)

    use_dropout = bool(training) and dropout_p > 0.0
    if use_dropout:
        if not (0.0 <= dropout_p < 1.0):
            raise ValueError("dropout_p must be in [0, 1) in training mode")
        if rng is None:
            rng = jax.random.PRNGKey(0)

    if vmem_limit_bytes is None:
        vmem_limit_bytes = 48 * 1024 * 1024
    cp = pltpu.CompilerParams(dimension_semantics=("parallel",),
                              vmem_limit_bytes=vmem_limit_bytes)

    # Row tiling: round to the 8-sublane rule, zero-pad the tail, and make sure
    # the row grid has >= 2 steps when possible (v7x megacore).
    tile = _round_up(min(row_tile, _round_up(M, 8)), 8)
    Mp = _round_up(M, tile)
    if Mp // tile < 2 and Mp >= 16:
        tile = _round_up(Mp // 2, 8)
        Mp = _round_up(M, tile)
    grid_rows = (Mp // tile,)

    def pad_rows(a):
        return a if a.shape[0] == Mp else jnp.pad(a, ((0, Mp - a.shape[0]), (0, 0)))

    x2 = pad_rows(x.reshape(M, D).astype(jnp.float32))       # f32 residual stream

    # Weights resident in bf16 (MXU-native).  1/sqrt(dk) folded into Wq/bq (f32
    # scaling, then bf16 cast) so K2 never touches the O(S^2) score tensor with
    # a VPU multiply.
    wqkv = jnp.concatenate([params["wq"] * scale, params["wk"], params["wv"]],
                           axis=1).astype(jnp.bfloat16)                  # (D, 3D)
    bqkv = jnp.concatenate([params["bq"] * scale, params["bk"], params["bv"]]
                           ).reshape(1, 3 * D).astype(jnp.float32)
    wo = params["wo"].astype(jnp.bfloat16)
    bo = params["bo"].reshape(1, D).astype(jnp.float32)
    w1 = params["w1"].astype(jnp.bfloat16)
    b1 = params["b1"].reshape(1, d_ff).astype(jnp.float32)
    w2 = params["w2"].astype(jnp.bfloat16)
    b2 = params["b2"].reshape(1, D).astype(jnp.float32)
    g1 = params["ln1_g"].reshape(1, D).astype(jnp.float32)
    be1 = params["ln1_b"].reshape(1, D).astype(jnp.float32)
    g2 = params["ln2_g"].reshape(1, D).astype(jnp.float32)
    be2 = params["ln2_b"].reshape(1, D).astype(jnp.float32)

    row_in = lambda cols: pl.BlockSpec((tile, cols), lambda i: (i, 0))
    vec_in = lambda cols: pl.BlockSpec((1, cols), lambda i: (0, 0))
    mat_in = lambda r, c: pl.BlockSpec((r, c), lambda i: (0, 0))

    # ---- K1: LN1 + fused QKV projection (bf16 activation out) ---------------
    qkv = pl.pallas_call(
        _ln_qkv_kernel,
        out_shape=jax.ShapeDtypeStruct((Mp, 3 * D), jnp.bfloat16),
        grid=grid_rows,
        in_specs=[row_in(D), vec_in(D), vec_in(D), mat_in(D, 3 * D), vec_in(3 * D)],
        out_specs=row_in(3 * D),
        compiler_params=cp,
    )(x2, g1, be1, wqkv, bqkv)

    qkv3 = qkv[:M].reshape(B, S, 3 * D)        # free reshape, no transpose

    # ---- K2: multi-head attention core (grid over batch) --------------------
    mask_f = mask.astype(jnp.float32).reshape(B, 1, S)
    qkv_spec = pl.BlockSpec((1, S, 3 * D), lambda b: (b, 0, 0))
    mask_spec = pl.BlockSpec((1, 1, S), lambda b: (b, 0, 0))
    ctx_spec = pl.BlockSpec((1, S, D), lambda b: (b, 0, 0))
    mha_specs = [qkv_spec, mask_spec]
    mha_inputs = [qkv3, mask_f]
    if use_dropout:
        rng, kd = jax.random.split(rng)
        mha_specs.append(pl.BlockSpec((1, n_heads, S, S), lambda b: (b, 0, 0, 0)))
        mha_inputs.append(_dropout_mask(kd, (B, n_heads, S, S), dropout_p))

    ctx = pl.pallas_call(
        functools.partial(_mha_core_kernel, n_heads=n_heads, dk=dk,
                          use_dropout=use_dropout),
        out_shape=jax.ShapeDtypeStruct((B, S, D), jnp.bfloat16),
        grid=(B,),
        in_specs=mha_specs,
        out_specs=ctx_spec,
        compiler_params=cp,
    )(*mha_inputs)

    ctx2 = pad_rows(ctx.reshape(M, D))          # bf16, free reshape (no transpose)

    # ---- K3 (fused): out-proj + dropout + residual + LN2 + FFN + dropout + residual
    k3_specs = [row_in(D), mat_in(D, D), vec_in(D), row_in(D), vec_in(D), vec_in(D),
                mat_in(D, d_ff), vec_in(d_ff), mat_in(d_ff, D), vec_in(D)]
    k3_inputs = [ctx2, wo, bo, x2, g2, be2, w1, b1, w2, b2]
    if use_dropout:
        rng, kd1 = jax.random.split(rng)
        rng, kd2 = jax.random.split(rng)
        rng, kd3 = jax.random.split(rng)
        k3_specs += [row_in(D), row_in(d_ff), row_in(D)]
        k3_inputs += [_dropout_mask(kd1, (Mp, D), dropout_p),
                      _dropout_mask(kd2, (Mp, d_ff), dropout_p),
                      _dropout_mask(kd3, (Mp, D), dropout_p)]
    out = pl.pallas_call(
        functools.partial(_proj_ffn_residual_kernel, use_dropout=use_dropout),
        out_shape=jax.ShapeDtypeStruct((Mp, D), jnp.float32),
        grid=grid_rows,
        in_specs=k3_specs,
        out_specs=row_in(D),
        compiler_params=cp,
    )(*k3_inputs)

    return out[:M].reshape(B, S, D)


# ----------------------------- pure-JAX reference -----------------------------

def _reference_encoder_layer(x, mask, params, n_heads):
    B, S, D = x.shape
    dk = D // n_heads

    def ln(z, g, b):
        mean = jnp.mean(z, axis=-1, keepdims=True)
        diff = z - mean
        var = jnp.sum(diff * diff, axis=-1, keepdims=True) / (z.shape[-1] - 1)
        return g * diff / jnp.sqrt(var + EPS) + b

    n1 = ln(x, params["ln1_g"], params["ln1_b"])

    def proj(z, w, b):
        return (z @ w + b).reshape(B, S, n_heads, dk).transpose(0, 2, 1, 3)

    q = proj(n1, params["wq"], params["bq"])
    k = proj(n1, params["wk"], params["bk"])
    v = proj(n1, params["wv"], params["bv"])
    scores = jnp.einsum("bhqd,bhkd->bhqk", q, k) / math.sqrt(dk)
    scores = jnp.where(mask.reshape(B, 1, 1, S) == 0, NEG_INF, scores)
    p_attn = jax.nn.softmax(scores, axis=-1)
    ctx = jnp.einsum("bhqk,bhkd->bhqd", p_attn, v)
    ctx = ctx.transpose(0, 2, 1, 3).reshape(B, S, D)
    x1 = x + ctx @ params["wo"] + params["bo"]
    n2 = ln(x1, params["ln2_g"], params["ln2_b"])
    h = jnp.maximum(n2 @ params["w1"] + params["b1"], 0.0)
    return x1 + h @ params["w2"] + params["b2"]


if __name__ == "__main__":
    B, S, D, H = 2, 8, 128, 4
    d_ff = 2 * D
    ks = jax.random.split(jax.random.PRNGKey(0), 16)

    def w_init(k, fan_in, shape):
        return jax.random.normal(k, shape, dtype=jnp.float32) / math.sqrt(fan_in)

    params = {
        "ln1_g": jnp.ones((D,), jnp.float32), "ln1_b": jnp.zeros((D,), jnp.float32),
        "ln2_g": jnp.ones((D,), jnp.float32), "ln2_b": jnp.zeros((D,), jnp.float32),
        "wq": w_init(ks[0], D, (D, D)), "bq": 0.02 * jax.random.normal(ks[1], (D,), jnp.float32),
        "wk": w_init(ks[2], D, (D, D)), "bk": 0.02 * jax.random.normal(ks[3], (D,), jnp.float32),
        "wv": w_init(ks[4], D, (D, D)), "bv": 0.02 * jax.random.normal(ks[5], (D,), jnp.float32),
        "wo": w_init(ks[6], D, (D, D)), "bo": 0.02 * jax.random.normal(ks[7], (D,), jnp.float32),
        "w1": w_init(ks[8], D, (D, d_ff)), "b1": 0.02 * jax.random.normal(ks[9], (d_ff,), jnp.float32),
        "w2": w_init(ks[10], d_ff, (d_ff, D)), "b2": 0.02 * jax.random.normal(ks[11], (D,), jnp.float32),
    }
    x = jax.random.normal(ks[12], (B, S, D), dtype=jnp.float32)
    mask = jnp.ones((B, 1, S), dtype=jnp.int32)
    mask = mask.at[1, 0, S - 2:].set(0)   # mask last two key positions of batch 1

    # Eval-mode forward (dropout = identity), checked vs pure-JAX f32 reference.
    out = encoder_layer_forward(x, mask, params, n_heads=H,
                                dropout_p=0.1, training=False)
    out = jax.block_until_ready(out)
    ref = _reference_encoder_layer(x, mask, params, H)
    assert out.shape == (B, S, D)
    # bf16 MXU operands / bf16 intermediates (f32 accumulation) -> loose tolerance.
    assert jnp.allclose(out, ref, atol=1e-1, rtol=1e-1), (
        "mismatch vs reference: max abs err = "
        f"{float(jnp.max(jnp.abs(out - ref)))}")
    assert bool(jnp.all(jnp.isfinite(out)))

    # Training-mode forward (wrapper-generated pre-scaled bf16 dropout masks) to
    # exercise the dropout path of every kernel.
    out_tr = encoder_layer_forward(x, mask, params, n_heads=H, dropout_p=0.1,
                                   training=True, rng=jax.random.PRNGKey(123))
    out_tr = jax.block_until_ready(out_tr)
    assert out_tr.shape == (B, S, D) and bool(jnp.all(jnp.isfinite(out_tr)))

    print("KERNEL_OK")
</pallas_src>

<mosaic_0001>
module attributes {stable_mosaic.version = 11 : i64} {
  func.func @_ln_qkv_kernel(%arg0: i32, %arg1: memref<8x128xf32, #tpu.memory_space<vmem>>, %arg2: memref<1x128xf32, #tpu.memory_space<vmem>>, %arg3: memref<1x128xf32, #tpu.memory_space<vmem>>, %arg4: memref<128x384xbf16, #tpu.memory_space<vmem>>, %arg5: memref<1x384xf32, #tpu.memory_space<vmem>>, %arg6: memref<8x384xbf16, #tpu.memory_space<vmem>>) attributes {dimension_semantics = [#tpu.dimension_semantics<parallel>], iteration_bounds = array<i64: 2>, scalar_prefetch = 0 : i64, scratch_operands = 0 : i64, tpu.core_type = #tpu.core_type<tc>, window_params = [{transform_indices = @transform_0, window_bounds = array<i64: 8, 128>}, {pipeline_mode = #tpu.pipeline_mode<synchronous>, transform_indices = @transform_1, window_bounds = array<i64: 1, 128>}, {pipeline_mode = #tpu.pipeline_mode<synchronous>, transform_indices = @transform_2, window_bounds = array<i64: 1, 128>}, {pipeline_mode = #tpu.pipeline_mode<synchronous>, transform_indices = @transform_3, window_bounds = array<i64: 128, 384>}, {pipeline_mode = #tpu.pipeline_mode<synchronous>, transform_indices = @transform_4, window_bounds = array<i64: 1, 384>}, {transform_indices = @transform_5, window_bounds = array<i64: 8, 384>}]} {
    %c0 = arith.constant 0 : index
    %c0_0 = arith.constant 0 : index
    %0 = vector.load %arg1[%c0, %c0_0] : memref<8x128xf32, #tpu.memory_space<vmem>>, vector<8x128xf32>
    %c0_1 = arith.constant 0 : index
    %c0_2 = arith.constant 0 : index
    %1 = vector.load %arg2[%c0_1, %c0_2] : memref<1x128xf32, #tpu.memory_space<vmem>>, vector<1x128xf32>
    %c0_3 = arith.constant 0 : index
    %c0_4 = arith.constant 0 : index
    %2 = vector.load %arg3[%c0_3, %c0_4] : memref<1x128xf32, #tpu.memory_space<vmem>>, vector<1x128xf32>
    %cst = arith.constant dense<0.000000e+00> : vector<8xf32>
    %3 = vector.multi_reduction <add>, %0, %cst [1] : vector<8x128xf32> to vector<8xf32>
    %4 = vector.shape_cast %3 : vector<8xf32> to vector<8x1xf32>
    %cst_5 = arith.constant 1.280000e+02 : f32
    %5 = vector.broadcast %cst_5 : f32 to vector<8x1xf32>
    %6 = arith.divf %4, %5 : vector<8x1xf32>
    %7 = vector.broadcast %6 : vector<8x1xf32> to vector<8x128xf32>
    %8 = arith.subf %0, %7 : vector<8x128xf32>
    %9 = arith.mulf %8, %8 : vector<8x128xf32>
    %cst_6 = arith.constant dense<0.000000e+00> : vector<8xf32>
    %10 = vector.multi_reduction <add>, %9, %cst_6 [1] : vector<8x128xf32> to vector<8xf32>
    %11 = vector.shape_cast %10 : vector<8xf32> to vector<8x1xf32>
    %cst_7 = arith.constant 1.270000e+02 : f32
    %12 = vector.broadcast %cst_7 : f32 to vector<8x1xf32>
    %13 = arith.divf %11, %12 : vector<8x1xf32>
    %cst_8 = arith.constant 9.99999997E-7 : f32
    %14 = vector.broadcast %cst_8 : f32 to vector<8x1xf32>
    %15 = arith.addf %13, %14 : vector<8x1xf32>
    %16 = math.rsqrt %15 : vector<8x1xf32>
    %17 = vector.broadcast %16 : vector<8x1xf32> to vector<8x128xf32>
    %18 = arith.mulf %8, %17 : vector<8x128xf32>
    %19 = vector.broadcast %1 : vector<1x128xf32> to vector<8x128xf32>
    %20 = arith.mulf %19, %18 : vector<8x128xf32>
    %21 = vector.broadcast %2 : vector<1x128xf32> to vector<8x128xf32>
    %22 = arith.addf %20, %21 : vector<8x128xf32>
    %23 = arith.truncf %22 : vector<8x128xf32> to vector<8x128xbf16>
    %c0_9 = arith.constant 0 : index
    %c0_10 = arith.constant 0 : index
    %24 = vector.load %arg4[%c0_9, %c0_10] : memref<128x384xbf16, #tpu.memory_space<vmem>>, vector<128x384xbf16>
    %cst_11 = arith.constant dense<0.000000e+00> : vector<8x384xf32>
    %25 = tpu.matmul %23, %24, %cst_11 {dimension_numbers = #tpu.dot_dimension_numbers<[1], [0], [0], [1], [0, 0, 1, 1], [], []>} : vector<8x128xbf16>, vector<128x384xbf16>, vector<8x384xf32> -> vector<8x384xf32>
    %c0_12 = arith.constant 0 : index
    %c0_13 = arith.constant 0 : index
    %26 = vector.load %arg5[%c0_12, %c0_13] : memref<1x384xf32, #tpu.memory_space<vmem>>, vector<1x384xf32>
    %27 = vector.broadcast %26 : vector<1x384xf32> to vector<8x384xf32>
    %28 = arith.addf %25, %27 : vector<8x384xf32>
    %29 = arith.truncf %28 : vector<8x384xf32> to vector<8x384xbf16>
    %c0_14 = arith.constant 0 : index
    %c0_15 = arith.constant 0 : index
    %30 = vector.load %arg6[%c0_14, %c0_15] : memref<8x384xbf16, #tpu.memory_space<vmem>>, vector<8x384xbf16>
    tpu.vector_store %arg6[%c0_14, %c0_15], %29 {strides = array<i32>} : memref<8x384xbf16, #tpu.memory_space<vmem>>, vector<8x384xbf16>,
    return
  }
  func.func @transform_0(%arg0: i32) -> (i32, i32) {
    %c0_i32 = arith.constant 0 : i32
    %c0_i32_0 = arith.constant 0 : i32
    return %arg0, %c0_i32 : i32, i32
  }
  func.func @transform_1(%arg0: i32) -> (i32, i32) {
    %c0_i32 = arith.constant 0 : i32
    %c0_i32_0 = arith.constant 0 : i32
    %c0_i32_1 = arith.constant 0 : i32
    return %c0_i32, %c0_i32_0 : i32, i32
  }
  func.func @transform_2(%arg0: i32) -> (i32, i32) {
    %c0_i32 = arith.constant 0 : i32
    %c0_i32_0 = arith.constant 0 : i32
    %c0_i32_1 = arith.constant 0 : i32
    return %c0_i32, %c0_i32_0 : i32, i32
  }
  func.func @transform_3(%arg0: i32) -> (i32, i32) {
    %c0_i32 = arith.constant 0 : i32
    %c0_i32_0 = arith.constant 0 : i32
    %c0_i32_1 = arith.constant 0 : i32
    return %c0_i32, %c0_i32_0 : i32, i32
  }
  func.func @transform_4(%arg0: i32) -> (i32, i32) {
    %c0_i32 = arith.constant 0 : i32
    %c0_i32_0 = arith.constant 0 : i32
    %c0_i32_1 = arith.constant 0 : i32
    return %c0_i32, %c0_i32_0 : i32, i32
  }
  func.func @transform_5(%arg0: i32) -> (i32, i32) {
    %c0_i32 = arith.constant 0 : i32
    %c0_i32_0 = arith.constant 0 : i32
    return %arg0, %c0_i32 : i32, i32
  }
}

</mosaic_0001>

<bundles_post_ra>
// kernel: tpu_custom_call.1
= control target key start
LH: loop header
LB: loop body
LE: loop exit
PB: predicated region body
PF: predicated region fallthrough
CT: control target
= control target key end

     0   :  { %10 = vsyncpa [#allocation3], 0  ;;  %s1198_s0 = inlined_call_operand.hbm [shape: f32[16,128], index: 0, kind: input, shape index: {}]   ;;  %s1199_s1 = inlined_call_operand.vmem [shape: f32[1,128], index: 1, kind: input, shape index: {}]   ;;  %s1200_s2 = inlined_call_operand.vmem [shape: f32[1,128], index: 2, kind: input, shape index: {}]   ;;  %s1201_s3 = inlined_call_operand.hbm [shape: bf16[128,384], index: 3, kind: input, shape index: {}]   ;;  %s1202_s4 = inlined_call_operand.vmem [shape: f32[1,384], index: 4, kind: input, shape index: {}]   ;;  %s1203_s5 = inlined_call_operand.hbm [shape: bf16[16,384], index: 5, kind: output, shape index: {}]  }
   0x1   :  { %12 = vsyncpa [#allocation3 + $0x1], 0 }
   0x2   :  { %13 = vsyncpa [#allocation6], 0 }
   0x3   :  { %14 = vsyncpa [#allocation4], 0 }
   0x4   :  { %16 = vsyncpa [#allocation4 + $0x1], 0  ;;  %s992_s18 = smov 0   ;;  %s994_s19 = smov 0  }
   0x5   :  { %s996_s20 = smov 0   ;;  %s998_s21 = smov 0  }
   0x6 LB: > { %s1013_s22 = sadd.s32 4294967295, %s952_s21   ;;  %s655_s23 = sadd.s32 4294967294, %s952_s21   ;;  %s952_s21 = sphi %s998_s21, %s1223_s21   ;;  %s948_s20 = sphi %s996_s20, %s1222_s20   ;;  %s944_s19 = sphi %s994_s19, %s1221_s19   ;;  %s940_s18 = sphi %s992_s18, %s1220_s18  }
   0x7   : > { %p42_p0 = scmp.ne.s32.totalorder %s944_s19, %s940_s18  ;;  %p1204_p1 = scmp.eq.s32.totalorder %s1013_s22, 0 }
   0x8   : > { %p156_p3 = scmp.eq.s32.totalorder %s655_s23, 1  ;;  %p656_p5 = scmp.ge.s32.totalorder %s952_s21, 1 }
   0x9   : > { %p1022_p4 = por %p1204_p1, %p42_p0  ;;  %p163_p7 = scmp.lt.s32.totalorder %s952_s21, 3 }
   0xa   : > { %p1027_p6 = por %p156_p3, %p42_p0  ;;  %s954_s27 = smov [#allocation5]  }
   0xb   : > { %s1207_s24 = scalar_select %p1022_p4, 1, 0 }
   0xc   : > { %s1208_s25 = scalar_select %p1027_p6, 1, 0 }
   0xd   : > { %p1032_p8 = pnand %p656_p5, %p163_p7  ;;  %s181_s28 = sshll.u32 %s954_s27, 4  ;;  %s1036_s28 = int_to_ptr.vmem [resolvable:$true] %s181_s28 }
   0xe   : > { %s1048_s30 = sadd.s32 1, %s952_s21   ;;  %s29_s6 = sadd.s32 1, %s948_s20 }
   0xf   : > { %s1209_s26 = scalar_select %p1032_p8, 1, 0 }
  0x10   : > { %p736_p9 = pneg %p1032_p8  ;;  %s26_s7 = ssub.s32 %s952_s21, %s1048_s30 }
  0x11   : > { %s824_s10 = scalar_lea.hbm %s1201_s3, 3072 }
  0x12   : > { %p1043_p11 = pnand %p736_p9, %p1204_p1  ;;  %p825_p12 = scmp.ne.s32.totalorder %s1201_s3, %s824_s10 }
  0x13   : > { %p831_p5 = scmp.lt.u32.totalorder %s824_s10, %s1201_s3 }
  0x14   : > { %p826_p13 = pneg %p1043_p11 }
  0x16   : > { %p827_p0 = pnand %p826_p13, %p825_p12 }
  0x18   : > { %p828_p3 = pneg %p827_p0 }
  0x1a   : > { %p833_p7 = pnand %p831_p5, %p828_p3 }
  0x1c   : > { %836 = shalt.err (!%p833_p7)
}
  0x1d   : > { %s837_s15 = scalar_lea.vmem %s1036_s28, 3072  ;;  %p845_p2 = scmp.lt.s32.totalorder %s1036_s28, %s1036_s28 }
  0x1e   : > { %p838_p9 = scmp.ne.s32.totalorder %s1036_s28, %s837_s15  ;;  %p846_p6 = scmp.lt.s32.totalorder %s837_s15, %s837_s15 }
  0x20   : > { %p840_p10 = pnand %p838_p9, %p826_p13  ;;  %p847_p4 = por %p846_p6, %p845_p2 }
  0x22   : > { %p841_p1 = pneg %p840_p10 }
  0x24   : > { %p848_p8 = pnand %p847_p4, %p841_p1 }
  0x26   : > { %851 = shalt.err (!%p848_p8)
}
  0x27   : > { %s955_s16 = smov 192   ;;  %s956_s17 = smov 12  }
  0x28   : > { %739 = dma.hbm_to_vmem [thread:$0]  (!%p1043_p11), %s1201_s3, 3072, %s1036_s28, [#allocation6], %s955_s16, %s955_s16, %s956_s17  }
  0x29   : > { %p27_p2 = scmp.eq.s32.totalorder %s26_s7, 0  ;;  %p36_p1 = scmp.ne.s32.totalorder %s948_s20, %s944_s19 }
  0x2a   : > { %p37_p4 = scmp.eq.s32.totalorder %s952_s21, 0  ;;  %p749_p6 = scmp.lt.s32.totalorder %s952_s21, 2 }
  0x2b   : > { %s1079_s8 = scalar_select %p27_p2, %s948_s20, %s29_s6  }
  0x2c   : > { %p38_p8 = por %p37_p4, %p36_p1  ;;  %p1211_p10 = scmp.eq.s32.totalorder %s1013_s22, 1 }
  0x2d   : > { %s198_s10 = sand.u32 1, %s948_s20   ;;  %s660_s11 = sshll.u32 %s952_s21, 7 }
  0x2e   : > { %p1083_p12 = por %p1211_p10, %p36_p1  ;;  %s659_s12 = sshll.u32 %s198_s10, 3 }
  0x2f   : > { %s1092_s14 = scalar_lea.hbm %s1198_s0, %s660_s11  ;;  %s202_s28 = scalar_lea.vmem [#allocation2], %s659_s12 }
  0x30   : > { %s209_s6 = sshll.u32 %s202_s28, 4  ;;  %p1094_p11 = pnand %p749_p6, %p38_p8  ;;  %s1098_s6 = int_to_ptr.vmem [resolvable:$true] %s209_s6 }
  0x31   : > { %s199_s15 = scalar_lea.sflag [#allocation3], %s198_s10  ;;  %s852_s16 = scalar_lea.hbm %s1092_s14, 128 }
  0x32   : > { %p853_p13 = scmp.ne.s32.totalorder %s1092_s14, %s852_s16  ;;  %p854_p0 = pneg %p1094_p11 }
  0x33   : > { %s857_s27 = scalar_lea.hbm %s1198_s0, 256  ;;  %p858_p7 = scmp.lt.u32.totalorder %s1092_s14, %s1198_s0 }
  0x34   : > { %p855_p3 = pnand %p854_p0, %p853_p13  ;;  %p859_p9 = scmp.lt.u32.totalorder %s857_s27, %s852_s16 }
  0x35   : > { %p861_p1 = scmp.lt.u32.totalorder %s852_s16, %s1092_s14 }
  0x36   : > { %p856_p5 = pneg %p855_p3  ;;  %p860_p2 = por %p859_p9, %p858_p7 }
  0x38   : > { %p862_p4 = por %p861_p1, %p860_p2 }
  0x3a   : > { %p863_p6 = pnand %p862_p4, %p856_p5 }
  0x3c   : > { %866 = shalt.err (!%p863_p6)
}
  0x3d   : > { %s867_s10 = scalar_lea.vmem %s1098_s6, 128  ;;  %s957_s29 = smov [#allocation2]  }
  0x3e   : > { %p868_p8 = scmp.ne.s32.totalorder %s1098_s6, %s867_s10  ;;  %s872_s13 = sshll.u32 %s957_s29, 4  ;;  %s873_s13 = int_to_ptr.vmem [resolvable:$false] %s872_s13 }
  0x3f   : > { %s874_s28 = scalar_lea.vmem %s873_s13, 256  ;;  %p875_p3 = scmp.lt.s32.totalorder %s1098_s6, %s873_s13 }
  0x40   : > { %p870_p10 = pnand %p868_p8, %p854_p0  ;;  %p876_p7 = scmp.lt.s32.totalorder %s874_s28, %s867_s10 }
  0x42   : > { %p871_p13 = pneg %p870_p10  ;;  %p877_p9 = por %p876_p7, %p875_p3 }
  0x44   : > { %p878_p2 = pnand %p877_p9, %p871_p13 }
  0x46   : > { %881 = shalt.err (!%p878_p2)
}
  0x47   : > { %743 = dma.hbm_to_vmem [thread:$0]  (!%p1094_p11), %s1092_s14, 128, %s1098_s6, %s199_s15  }
  0x48   : > { %p1214_p5 = scmp.ne.s32.totalorder %s1209_s26, 0 }
  0x49   : > { %s1128_s16 = sand.u32 (!%p1214_p5), 1, %s944_s19   ;;  %p1215_p0 = scmp.ne.s32.totalorder (!%p1214_p5), %s1207_s24, 0 }
  0x4a   : > { %218 = sbr.rel (%p1214_p5) target bundleno = 630 (0x276), region = 40  ;;  %s662_s17 = sshll.u32 (!%p1214_p5), %s1128_s16, 3 }
  0x4b   : > { %s221_s23 = scalar_lea.sflag (!%p1214_p5), [#allocation3], %s1128_s16  ;;  %s224_s27 = scalar_lea.vmem (!%p1214_p5), [#allocation2], %s662_s17 }
  0x51   : > { %927 = dma.done.wait (%p1215_p0), %s221_s23, 128  }
  0x52   : > { %929 = vsyncadd (%p1215_p0), %s221_s23, 4294967168  ;;  %p1216_p1 = scmp.eq.s32.totalorder %s1013_s22, 0 }
  0x54   : > { %931 = dma.done.wait (%p1216_p1), [#allocation6], 3072   ;;  %p1217_p11 = pmov %p1216_p1 }
  0x55   : > { %v256_v0 = vld [vmem:[%s224_s27] sm:$0xff]  ;;  %v792_v2 = vld [vmem:[#allocation5] ss:$12 sps:$4 sm:$0xff]   ;;  %v958_v3 = vmov 0.0   ;;  %v959_v25 = vmov 0   ;;  %vm960_vm0 = vmmov 0   ;;  %v321_v41 = vlaneseq }
  0x56   : > { %933 = vsyncadd (%p1217_p11), [#allocation6], 4294964224  ;;  %259 = vadd.xlane.f32.xlu0 %v256_v0  ;;  %v790_v1 = vld [vmem:[#allocation5 + $0x4] ss:$12 sps:$4 sm:$0xff]   ;;  %706 = vmatprep.subr.bf16.mxu1 %v958_v3  ;;  %v793_v4 = vld [vmem:[#allocation5 + $0x8] ss:$12 sps:$4 sm:$0xff]  }
  0x57   : > { %v794_v5 = vld [vmem:[#allocation5 + $0x1c] ss:$12 sps:$4 sm:$0xff]   ;;  %464 = vmatprep.subr.bf16.mxu0 %v790_v1  ;;  %707 = vmatpush3.bf16.msra.mxu1 %v793_v4  ;;  %v796_v6 = vld [vmem:[#allocation5 + $0x18] ss:$12 sps:$4 sm:$0xff]   ;;  %v797_v7 = vld [vmem:[#allocation5 + $0x20] ss:$12 sps:$4 sm:$0xff]  }
  0x58   : > { %465 = vmatpush1.bf16.msra.mxu0 %v792_v2  ;;  %708 = vmatprep.subr.bf16.mxu1 %v958_v3  ;;  %v798_v8 = vld [vmem:[#allocation5 + $0x34] ss:$12 sps:$4 sm:$0xff]   ;;  %v800_v13 = vld [vmem:[#allocation5 + $0x30] ss:$12 sps:$4 sm:$0xff]   ;;  %v801_v14 = vld [vmem:[#allocation5 + $0x38] ss:$12 sps:$4 sm:$0xff]  }
  0x59   : > { %466 = vmatprep.subr.bf16.mxu0 %v794_v5  ;;  %v802_v15 = vld [vmem:[#allocation5 + $0x4c] ss:$12 sps:$4 sm:$0xff]   ;;  %v804_v16 = vld [vmem:[#allocation5 + $0x48] ss:$12 sps:$4 sm:$0xff]   ;;  %v805_v17 = vld [vmem:[#allocation5 + $0x50] ss:$12 sps:$4 sm:$0xff]   ;;  %496 = vmatprep.mubr.bf16.mxu0 %v959_v25 }
  0x5a   : > { %v806_v18 = vld [vmem:[#allocation5 + $0x64] ss:$12 sps:$4 sm:$0xff]   ;;  %v808_v19 = vld [vmem:[#allocation5 + $0x60] ss:$12 sps:$4 sm:$0xff]   ;;  %v809_v20 = vld [vmem:[#allocation5 + $0x68] ss:$12 sps:$4 sm:$0xff]   ;;  %722 = vmatprep.mubr.msk.bf16.mxu1 %vm960_vm0, %v958_v3 }
  0x5b   : > { %709 = vmatpush3.bf16.msra.mxu1 %v797_v7  ;;  %v810_v21 = vld [vmem:[#allocation5 + $0x7c] ss:$12 sps:$4 sm:$0xff]   ;;  %v812_v22 = vld [vmem:[#allocation5 + $0x78] ss:$12 sps:$4 sm:$0xff]   ;;  %v813_v23 = vld [vmem:[#allocation5 + $0x80] ss:$12 sps:$4 sm:$0xff]  }
  0x5c   : > { %467 = vmatpush1.bf16.msra.mxu0 %v796_v6  ;;  %710 = vmatprep.subr.bf16.mxu1 %v958_v3  ;;  %v814_v24 = vld [vmem:[#allocation5 + $0x94] ss:$12 sps:$4 sm:$0xff]   ;;  %v816_v26 = vld [vmem:[#allocation5 + $0x90] ss:$12 sps:$4 sm:$0xff]   ;;  %v817_v27 = vld [vmem:[#allocation5 + $0x98] ss:$12 sps:$4 sm:$0xff]  }
  0x5d   : > { %468 = vmatprep.subr.bf16.mxu0 %v798_v8  ;;  %v818_v28 = vld [vmem:[#allocation5 + $0xac] ss:$12 sps:$4 sm:$0xff]   ;;  %v820_v29 = vld [vmem:[#allocation5 + $0xa8] ss:$12 sps:$4 sm:$0xff]   ;;  %v821_v30 = vld [vmem:[#allocation5 + $0xb0] ss:$12 sps:$4 sm:$0xff]  }
  0x5e   : > { %v664_v35 = vld [vmem:[%s1199_s1] ss:$0 sm:$0xff]  ;;  %v322_v42 = vshrl.u32 %v321_v41, 7  ;;  %s726_s11 = smul.u32 12, %s1128_s16  ;;  %s961_s27 = smov [#allocation7]  }
  0x5f   : > { %711 = vmatpush3.bf16.msra.mxu1 %v801_v14  ;;  %v665_v37 = vld [vmem:[%s1200_s2] ss:$0 sm:$0xff]  ;;  %s727_s12 = smul.u32 192, %s1013_s22  ;;  %s561_s22 = scalar_lea.sflag [#allocation4], %s1128_s16 }
  0x60   : > { %469 = vmatpush1.bf16.msra.mxu0 %v800_v13  ;;  %712 = vmatprep.subr.bf16.mxu1 %v958_v3  ;;  %v323_v43 = vsub.s32 0, %v322_v42  ;;  %v331_v44 = vsub.s32 2, %v322_v42  ;;  %v319_v45 = vld [vmem:[%s1202_s4] sm:$0x7]  ;;  %v327_v46 = vsub.s32 1, %v322_v42  ;;  %s254_s10 = scalar_lea.vmem [#allocation7], %s726_s11 }
  0x61   : > { %470 = vmatprep.subr.bf16.mxu0 %v802_v15  ;;  %s575_s29 = sshll.u32 %s254_s10, 4  ;;  %s1154_s17 = scalar_lea.hbm %s1203_s5, %s727_s12  ;;  %s1156_s29 = int_to_ptr.vmem [resolvable:$true] %s575_s29 }
  0x62   : > { %v324_v47 = vrot.slane %v319_v45, %v323_v43  ;;  %v332_v48 = vrot.slane %v319_v45, %v331_v44  ;;  %v328_v49 = vrot.slane %v319_v45, %v327_v46  ;;  %s882_s23 = scalar_lea.vmem %s1156_s29, 192  ;;  %s886_s24 = sshll.u32 %s961_s27, 4  ;;  %s887_s24 = int_to_ptr.vmem [resolvable:$false] %s886_s24 }
  0x63   : > { %713 = vmatpush3.bf16.msra.mxu1 %v805_v17  ;;  %p883_p4 = scmp.ne.s32.totalorder %s1156_s29, %s882_s23  ;;  %s888_s26 = scalar_lea.vmem %s887_s24, 384 }
  0x64   : > { %471 = vmatpush1.bf16.msra.mxu0 %v804_v16  ;;  %714 = vmatprep.subr.bf16.mxu1 %v958_v3  ;;  %p889_p10 = scmp.lt.s32.totalorder %s1156_s29, %s887_s24  ;;  %p890_p13 = scmp.lt.s32.totalorder %s888_s26, %s882_s23 }
  0x65   : > { %472 = vmatprep.subr.bf16.mxu0 %v806_v18  ;;  %p884_p6 = pnand %p883_p4, %p1083_p12 }
  0x66   : > { %p891_p3 = por %p890_p13, %p889_p10 }
  0x67   : > { %715 = vmatpush3.bf16.msra.mxu1 %v809_v20  ;;  %p885_p8 = pneg %p884_p6 }
  0x68   : > { %473 = vmatpush1.bf16.msra.mxu0 %v808_v19  ;;  %716 = vmatprep.subr.bf16.mxu1 %v958_v3 }
  0x69   : > { %474 = vmatprep.subr.bf16.mxu0 %v810_v21  ;;  %p892_p7 = pnand %p891_p3, %p885_p8 }
  0x6b   : > { %717 = vmatpush3.bf16.msra.mxu1 %v813_v23 }
  0x6c   : > { %475 = vmatpush1.bf16.msra.mxu0 %v812_v22  ;;  %718 = vmatprep.subr.bf16.mxu1 %v958_v3 }
  0x6d   : > { %476 = vmatprep.subr.bf16.mxu0 %v814_v24 }
  0x6f   : > { %719 = vmatpush3.bf16.msra.mxu1 %v817_v27 }
  0x70   : > { %477 = vmatpush1.bf16.msra.mxu0 %v816_v26  ;;  %720 = vmatprep.subr.bf16.mxu1 %v958_v3 }
  0x71   : > { %478 = vmatprep.subr.bf16.mxu0 %v818_v28 }
  0x73   : > { %721 = vmatpush3.bf16.msra.mxu1 %v821_v30 }
  0x74   : > { %479 = vmatpush1.bf16.msra.mxu0 %v820_v29 }
  0xe3   : > { %v260_v9 = vpop.xlane.xlu0 %259 }
  0xe4   : > { %v262_v10 = vmul.f32 0.0078125, %v260_v9 }
  0xe6   : > { %v263_v11 = vsub.f32 %v256_v0, %v262_v10 }
  0xe8   : > { %v264_v12 = vmul.f32 %v263_v11, %v263_v11 }
  0xea   : > { %265 = vadd.xlane.f32.xlu0 %v264_v12 }
 0x177   : > { %v266_v31 = vpop.xlane.xlu0 %265 }
 0x178   : > { %v268_v32 = vmul.f32 0.007874016, %v266_v31 }
 0x17a   : > { %v269_v33 = vadd.f32 1e-06, %v268_v32 }
 0x17c   : > { %822 = vrsqrt.f32 %v269_v33 }
 0x186   : > { %v823_v34 = vpop.eup %822 }
 0x187   : > { %v271_v36 = vmul.f32 %v823_v34, %v263_v11 }
 0x189   : > { %v278_v38 = vmul.f32 %v664_v35, %v271_v36 }
 0x18b   : > { %v285_v39 = vadd.f32 %v665_v37, %v278_v38 }
 0x18d   : > { %v286_v40 = vpack.c.bf16 %v285_v39, %v285_v39 }
 0x18f   : > { %497 = vmatmul.mubr.bf16.vlgmr.msra.gmra.mrb[0].mxu0 %v286_v40  ;;  %723 = vmatmul.mubr.bf16.vlgmr.msra.gmra.mrb[0].mxu1 %v286_v40 }
 0x262   : > { %v498_v50 = vpop.f32.mrb[0].mxu0  ;;  %v539_v51 = vpop.f32.mrb[0].mxu1 }
 0x263   : > { %v499_v52 = vadd.f32 %v498_v50, %v324_v47  ;;  %v540_v53 = vadd.f32 %v539_v51, %v332_v48  ;;  %v500_v54 = vpop.f32.mrb[1].mxu0  ;;  %v724_v55 = vpop.f32.mrb[1].mxu1 }
 0x264   : > { %v501_v56 = vadd.f32 %v500_v54, %v328_v49  ;;  %v502_v57 = vpop.f32.mrb[2].mxu0  ;;  %v542_v58 = vpop.f32.mrb[2].mxu1 }
 0x265   : > { %v696_v59 = vpack.c.bf16 %v540_v53, %v540_v53  ;;  %v503_v60 = vpop.f32.mrb[3].mxu0  ;;  %v725_v61 = vpop.f32.mrb[3].mxu1 }
 0x266   : > { %v695_v62 = vpack.c.bf16 %v501_v56, %v499_v52 }
 0x267   : > { %559 = vst [vmem:[%s254_s10 + $0x8] sm:$0xf] %v696_v59 }
 0x268   : > { %558 = vst [vmem:[%s254_s10] sm:$0xff] %v695_v62 }
 0x269   : > { %895 = shalt.err (!%p892_p7)
}
 0x26a   : > { %s896_s16 = scalar_lea.hbm %s1154_s17, 192  ;;  %s900_s7 = scalar_lea.hbm %s1203_s5, 384 }
 0x26b   : > { %p897_p9 = scmp.ne.s32.totalorder %s1154_s17, %s896_s16  ;;  %p901_p0 = scmp.lt.u32.totalorder %s1154_s17, %s1203_s5 }
 0x26c   : > { %p902_p1 = scmp.lt.u32.totalorder %s900_s7, %s896_s16  ;;  %p904_p4 = scmp.lt.u32.totalorder %s896_s16, %s1154_s17 }
 0x26d   : > { %p898_p2 = pnand %p897_p9, %p1083_p12 }
 0x26e   : > { %p903_p11 = por %p902_p1, %p901_p0 }
 0x26f   : > { %p899_p5 = pneg %p898_p2 }
 0x270   : > { %p905_p6 = por %p904_p4, %p903_p11 }
 0x272   : > { %p906_p8 = pnand %p905_p6, %p899_p5 }
 0x274   : > { %909 = shalt.err (!%p906_p8)
}
 0x275   : > { %734 = dma.vmem_to_hbm [thread:$0]  (%p1083_p12), %s1156_s29, 192, %s1154_s17, %s561_s22  }
 0x276 PF: > { %s587_s12 = sand.u32 1, %s940_s18   ;;  %p1218_p10 = scmp.ne.s32.totalorder %s1208_s25, 0 }
 0x277   : > { %p1219_p13 = scmp.ge.s32.totalorder %s952_s21, 2  ;;  %s588_s10 = scalar_lea.sflag [#allocation4], %s587_s12 }
 0x279   : > { %p745_p3 = pnand %p1219_p13, %p1218_p10 }
 0x27b   : > { %935 = dma.done.wait (!%p745_p3), %s588_s10, 192  }
 0x27c   : > { %937 = vsyncadd (!%p745_p3), %s588_s10, 4294967104  ;;  %p19_p7 = scmp.ge.s32.totalorder %s1048_s30, 4   ;;  %s1220_s18 = smov %s944_s19 }
 0x27d   : > { %s1221_s19 = smov %s948_s20  ;;  %s1222_s20 = smov %s1079_s8 }
 0x27e   : > { %s1223_s21 = smov %s1048_s30  ;;  %21 = sbr.rel (!%p19_p7) target bundleno = 6 (0x6), region = 89 }
 0x285   :  { %593 = vsyncpa [#allocation3], 1 }
 0x286   :  { %595 = vsyncpa [#allocation3 + $0x1], 1 }
 0x287   :  { %596 = vsyncpa [#allocation6], 1 }
 0x288   :  { %597 = vsyncpa [#allocation4], 1 }
 0x289   :  { %599 = vsyncpa [#allocation4 + $0x1], 1 }

</bundles_post_ra>
